<compile_context>
chip_gen: v7x
topology: tpu7x:2x2x1
jax: 0.10.0
libtpu: 0.0.40
codegen_flags: <defaults>
</compile_context>

<pallas_src>
import jax
import jax.numpy as jnp
from jax import lax
from jax.experimental import pallas as pl
from jax.experimental.pallas import tpu as pltpu

LOGIT_PAD = 128  # lane-dense logits slab width


# --------------------------------------------------------------------------
# Host-side weight re-packing (done once, outside the kernel)
# --------------------------------------------------------------------------
def _conv_toeplitz(w_hwio, W):
    """(3,3,Cin,Cout) HWIO conv weights -> (3, W*Cin, W*Cout) banded matrices.

    M[kh][s*Cin + c, j*Cout + o] = w[kh, kw, c, o] with kw = s - j + 1,
    and zero where s - j + 1 is outside [0, 2].  This bakes SAME-padding along W
    directly into the weights, so the kernel never slices along the lane axis.
    """
    KH, KW, Cin, Cout = w_hwio.shape
    kw = jnp.arange(KW)[:, None, None]
    src = jnp.arange(W)[None, :, None]
    dst = jnp.arange(W)[None, None, :]
    sel = (src == dst + kw - 1).astype(w_hwio.dtype)           # (KW, W, W)
    m = jnp.einsum("ksj,hkco->hscjo", sel, w_hwio)             # (KH, W, Cin, W, Cout)
    return m.reshape(KH, W * Cin, W * Cout)


def _fold_gap_into_fc(fc_w, fc_b, H, W, pad_to=LOGIT_PAD):
    """Fold global-average-pool (1/(H*W), tiled over W) into the FC weight and
    zero-pad the K logits to a 128-lane slab so the store is unmasked."""
    C, K = fc_w.shape
    fcw = jnp.tile(fc_w, (W, 1)) * (1.0 / float(H * W))        # (W*C, K)
    fcw = jnp.pad(fcw, ((0, 0), (0, pad_to - K)))
    fcb = jnp.pad(fc_b, ((0, 0), (0, pad_to - K)))             # (1, pad_to)
    return fcw, fcb


# --------------------------------------------------------------------------
# Fused kernel: conv1+ReLU -> conv2+ReLU -> GAP+linear, one batch element / step
# --------------------------------------------------------------------------
def _ssl_fused_kernel(x_ref, w1_ref, b1_ref, w2_ref, b2_ref, fcw_ref, fcb_ref,
                      f1_ref, f2_ref, logit_ref):
    H = x_ref.shape[1]

    def conv3x3_relu(x2d, w_ref, b_ref):
        # x2d: lane-dense (H, W*Cin); w_ref: (3, W*Cin, W*Cout); b_ref: (1, W*Cout)
        z = jnp.zeros((1, x2d.shape[1]), jnp.float32)
        xp = jnp.concatenate([z, x2d, z], axis=0)              # SAME-pad in H only
        acc = jnp.dot(xp[0:H, :], w_ref[0], preferred_element_type=jnp.float32)
        acc = acc + jnp.dot(xp[1:1 + H, :], w_ref[1],
                            preferred_element_type=jnp.float32)
        acc = acc + jnp.dot(xp[2:2 + H, :], w_ref[2],
                            preferred_element_type=jnp.float32)
        return jnp.maximum(acc + b_ref[...], 0.0)              # bias + fused ReLU

    x = x_ref[0].astype(jnp.float32)                           # (H, W*Cin)
    f1 = conv3x3_relu(x, w1_ref, b1_ref)                       # (H, W*C1) = (16,128)
    f1_ref[0] = f1.astype(f1_ref.dtype)                        # hook 0 (lane-dense)

    f2 = conv3x3_relu(f1, w2_ref, b2_ref)                      # (H, W*C2) = (16,256)
    f2_ref[0] = f2.astype(f2_ref.dtype)                        # hook 1 (lane-dense)

    # GAP + linear head: pooling scale and W-tiling already folded into fcw_ref.
    t = jnp.dot(f2, fcw_ref[...], preferred_element_type=jnp.float32)   # (H, 128)
    logits = jnp.sum(t, axis=0, keepdims=True) + fcb_ref[...]           # (1, 128)
    logit_ref[0] = logits.astype(logit_ref.dtype)


def _ssl_fused_call(x2d, w1t, b1l, w2t, b2l, fcw, fcb, H, W, C1, C2):
    N = x2d.shape[0]
    grid_spec = pltpu.PrefetchScalarGridSpec(
        num_scalar_prefetch=0,
        grid=(N,),
        in_specs=[
            pl.BlockSpec((1, H, x2d.shape[2]), lambda n: (n, 0, 0)),
            pl.BlockSpec(w1t.shape, lambda n: (0, 0, 0)),
            pl.BlockSpec(b1l.shape, lambda n: (0, 0)),
            pl.BlockSpec(w2t.shape, lambda n: (0, 0, 0)),
            pl.BlockSpec(b2l.shape, lambda n: (0, 0)),
            pl.BlockSpec(fcw.shape, lambda n: (0, 0)),
            pl.BlockSpec(fcb.shape, lambda n: (0, 0)),
        ],
        out_specs=[
            pl.BlockSpec((1, H, W * C1), lambda n: (n, 0, 0)),
            pl.BlockSpec((1, H, W * C2), lambda n: (n, 0, 0)),
            pl.BlockSpec((1, 1, LOGIT_PAD), lambda n: (n, 0, 0)),
        ],
    )
    out_shape = (
        jax.ShapeDtypeStruct((N, H, W * C1), jnp.float32),
        jax.ShapeDtypeStruct((N, H, W * C2), jnp.float32),
        jax.ShapeDtypeStruct((N, 1, LOGIT_PAD), jnp.float32),
    )
    return pl.pallas_call(
        _ssl_fused_kernel,
        out_shape=out_shape,
        grid_spec=grid_spec,
        compiler_params=pltpu.CompilerParams(
            dimension_semantics=("parallel",)),   # batch axis -> both TCs on v7x
    )(x2d, w1t, b1l, w2t, b2l, fcw, fcb)


# --------------------------------------------------------------------------
# SSLModel forward: backbone + feature hooks -> (features_list, outputs)
# --------------------------------------------------------------------------
def init_params(key, cin=4, c1=8, c2=16, num_classes=10):
    k1, k2, k3, k4, k5, k6 = jax.random.split(key, 6)
    return {
        # conv weights stored HWIO (kh, kw, Cin, Cout)
        "conv1_w": 0.1 * jax.random.normal(k1, (3, 3, cin, c1), jnp.float32),
        "conv1_b": 0.1 * jax.random.normal(k2, (1, c1), jnp.float32),
        "conv2_w": 0.1 * jax.random.normal(k3, (3, 3, c1, c2), jnp.float32),
        "conv2_b": 0.1 * jax.random.normal(k4, (1, c2), jnp.float32),
        "fc_w": 0.1 * jax.random.normal(k5, (c2, num_classes), jnp.float32),
        "fc_b": 0.1 * jax.random.normal(k6, (1, num_classes), jnp.float32),
    }


def ssl_model_forward(x_nchw, params):
    """Equivalent of SSLModel.forward: returns ([feat1, feat2], logits)."""
    N, Cin, H, W = x_nchw.shape
    C1 = params["conv1_w"].shape[-1]
    C2 = params["conv2_w"].shape[-1]
    K = params["fc_w"].shape[-1]

    # Lane-dense input rows: (N, H, W*Cin).
    x2d = jnp.transpose(x_nchw, (0, 2, 3, 1)).reshape(N, H, W * Cin)

    # Re-pack weights once (outside the kernel).
    w1t = _conv_toeplitz(params["conv1_w"], W)                  # (3, W*Cin, W*C1)
    b1l = jnp.tile(params["conv1_b"], (1, W))                   # (1, W*C1)
    w2t = _conv_toeplitz(params["conv2_w"], W)                  # (3, W*C1, W*C2)
    b2l = jnp.tile(params["conv2_b"], (1, W))                   # (1, W*C2)
    fcw, fcb = _fold_gap_into_fc(params["fc_w"], params["fc_b"], H, W)

    f1_2d, f2_2d, logits_pad = _ssl_fused_call(
        x2d, w1t, b1l, w2t, b2l, fcw, fcb, H, W, C1, C2)

    # Unflatten the lane-dense hook features back to NCHW (PyTorch hook layout).
    f1 = f1_2d.reshape(N, H, W, C1)
    f2 = f2_2d.reshape(N, H, W, C2)
    features = [jnp.transpose(f1, (0, 3, 1, 2)),
                jnp.transpose(f2, (0, 3, 1, 2))]
    logits = logits_pad[:, 0, :K]
    return features, logits


# Pure-JAX reference (correctness sanity check only)
def _ref_forward(x_nchw, params):
    x = jnp.transpose(x_nchw, (0, 2, 3, 1))
    dn = ("NHWC", "HWIO", "NHWC")
    f1 = lax.conv_general_dilated(x, params["conv1_w"], (1, 1), "SAME",
                                  dimension_numbers=dn) + params["conv1_b"][0]
    f1 = jnp.maximum(f1, 0.0)
    f2 = lax.conv_general_dilated(f1, params["conv2_w"], (1, 1), "SAME",
                                  dimension_numbers=dn) + params["conv2_b"][0]
    f2 = jnp.maximum(f2, 0.0)
    pooled = jnp.mean(f2, axis=(1, 2))
    logits = pooled @ params["fc_w"] + params["fc_b"][0]
    return ([jnp.transpose(f1, (0, 3, 1, 2)),
             jnp.transpose(f2, (0, 3, 1, 2))], logits)


if __name__ == "__main__":
    key = jax.random.PRNGKey(0)
    kx, kp = jax.random.split(key)

    # PyTorch-style NCHW input: batch=2, channels=4, spatial=16x16
    x = jax.random.normal(kx, (2, 4, 16, 16), jnp.float32)
    params = init_params(kp, cin=4, c1=8, c2=16, num_classes=10)

    fwd = jax.jit(ssl_model_forward)
    features, logits = fwd(x, params)
    jax.block_until_ready(features)
    jax.block_until_ready(logits)

    # Sanity check against a pure-JAX reference
    ref_feats, ref_logits = _ref_forward(x, params)
    for f, rf in zip(features, ref_feats):
        assert f.shape == rf.shape
        assert jnp.allclose(f, rf, atol=1e-4, rtol=1e-4)
    assert jnp.allclose(logits, ref_logits, atol=1e-4, rtol=1e-4)

    print("KERNEL_OK")
</pallas_src>

<mosaic_0001>
module attributes {stable_mosaic.version = 11 : i64} {
  func.func @_ssl_fused_kernel(%arg0: i32, %arg1: memref<1x16x64xf32, #tpu.memory_space<vmem>>, %arg2: memref<3x64x128xf32, #tpu.memory_space<vmem>>, %arg3: memref<1x128xf32, #tpu.memory_space<vmem>>, %arg4: memref<3x128x256xf32, #tpu.memory_space<vmem>>, %arg5: memref<1x256xf32, #tpu.memory_space<vmem>>, %arg6: memref<256x128xf32, #tpu.memory_space<vmem>>, %arg7: memref<1x128xf32, #tpu.memory_space<vmem>>, %arg8: memref<1x16x128xf32, #tpu.memory_space<vmem>>, %arg9: memref<1x16x256xf32, #tpu.memory_space<vmem>>, %arg10: memref<1x1x128xf32, #tpu.memory_space<vmem>>) attributes {dimension_semantics = [#tpu.dimension_semantics<parallel>], iteration_bounds = array<i64: 2>, scalar_prefetch = 0 : i64, scratch_operands = 0 : i64, tpu.core_type = #tpu.core_type<tc>, window_params = [{transform_indices = @transform_0, window_bounds = array<i64: 1, 16, 64>}, {pipeline_mode = #tpu.pipeline_mode<synchronous>, transform_indices = @transform_1, window_bounds = array<i64: 3, 64, 128>}, {pipeline_mode = #tpu.pipeline_mode<synchronous>, transform_indices = @transform_2, window_bounds = array<i64: 1, 128>}, {pipeline_mode = #tpu.pipeline_mode<synchronous>, transform_indices = @transform_3, window_bounds = array<i64: 3, 128, 256>}, {pipeline_mode = #tpu.pipeline_mode<synchronous>, transform_indices = @transform_4, window_bounds = array<i64: 1, 256>}, {pipeline_mode = #tpu.pipeline_mode<synchronous>, transform_indices = @transform_5, window_bounds = array<i64: 256, 128>}, {pipeline_mode = #tpu.pipeline_mode<synchronous>, transform_indices = @transform_6, window_bounds = array<i64: 1, 128>}, {transform_indices = @transform_7, window_bounds = array<i64: 1, 16, 128>}, {transform_indices = @transform_8, window_bounds = array<i64: 1, 16, 256>}, {transform_indices = @transform_9, window_bounds = array<i64: 1, 1, 128>}]} {
    %c0 = arith.constant 0 : index
    %c0_0 = arith.constant 0 : index
    %c0_1 = arith.constant 0 : index
    %0 = vector.load %arg1[%c0, %c0_0, %c0_1] : memref<1x16x64xf32, #tpu.memory_space<vmem>>, vector<1x16x64xf32>
    %1 = vector.shape_cast %0 : vector<1x16x64xf32> to vector<16x64xf32>
    %cst = arith.constant 0.000000e+00 : f32
    %2 = vector.broadcast %cst : f32 to vector<1x64xf32>
    %3 = tpu.concatenate %2, %1, %2 in 0 : vector<1x64xf32>, vector<16x64xf32>, vector<1x64xf32> -> vector<18x64xf32>
    %4 = vector.extract_strided_slice %3 {offsets = [0, 0], sizes = [16, 64], strides = [1, 1]} : vector<18x64xf32> to vector<16x64xf32>
    %c0_2 = arith.constant 0 : index
    %c0_3 = arith.constant 0 : index
    %c0_4 = arith.constant 0 : index
    %5 = vector.load %arg2[%c0_2, %c0_3, %c0_4] : memref<3x64x128xf32, #tpu.memory_space<vmem>>, vector<1x64x128xf32>
    %6 = vector.shape_cast %5 : vector<1x64x128xf32> to vector<64x128xf32>
    %cst_5 = arith.constant dense<0.000000e+00> : vector<16x128xf32>
    %7 = tpu.matmul %4, %6, %cst_5 {dimension_numbers = #tpu.dot_dimension_numbers<[1], [0], [0], [1], [0, 0, 1, 1], [], []>} : vector<16x64xf32>, vector<64x128xf32>, vector<16x128xf32> -> vector<16x128xf32>
    %8 = vector.extract_strided_slice %3 {offsets = [1, 0], sizes = [16, 64], strides = [1, 1]} : vector<18x64xf32> to vector<16x64xf32>
    %c1 = arith.constant 1 : index
    %c0_6 = arith.constant 0 : index
    %c0_7 = arith.constant 0 : index
    %9 = vector.load %arg2[%c1, %c0_6, %c0_7] : memref<3x64x128xf32, #tpu.memory_space<vmem>>, vector<1x64x128xf32>
    %10 = vector.shape_cast %9 : vector<1x64x128xf32> to vector<64x128xf32>
    %cst_8 = arith.constant dense<0.000000e+00> : vector<16x128xf32>
    %11 = tpu.matmul %8, %10, %cst_8 {dimension_numbers = #tpu.dot_dimension_numbers<[1], [0], [0], [1], [0, 0, 1, 1], [], []>} : vector<16x64xf32>, vector<64x128xf32>, vector<16x128xf32> -> vector<16x128xf32>
    %12 = arith.addf %7, %11 : vector<16x128xf32>
    %13 = vector.extract_strided_slice %3 {offsets = [2, 0], sizes = [16, 64], strides = [1, 1]} : vector<18x64xf32> to vector<16x64xf32>
    %c2 = arith.constant 2 : index
    %c0_9 = arith.constant 0 : index
    %c0_10 = arith.constant 0 : index
    %14 = vector.load %arg2[%c2, %c0_9, %c0_10] : memref<3x64x128xf32, #tpu.memory_space<vmem>>, vector<1x64x128xf32>
    %15 = vector.shape_cast %14 : vector<1x64x128xf32> to vector<64x128xf32>
    %cst_11 = arith.constant dense<0.000000e+00> : vector<16x128xf32>
    %16 = tpu.matmul %13, %15, %cst_11 {dimension_numbers = #tpu.dot_dimension_numbers<[1], [0], [0], [1], [0, 0, 1, 1], [], []>} : vector<16x64xf32>, vector<64x128xf32>, vector<16x128xf32> -> vector<16x128xf32>
    %17 = arith.addf %12, %16 : vector<16x128xf32>
    %c0_12 = arith.constant 0 : index
    %c0_13 = arith.constant 0 : index
    %18 = vector.load %arg3[%c0_12, %c0_13] : memref<1x128xf32, #tpu.memory_space<vmem>>, vector<1x128xf32>
    %19 = vector.broadcast %18 : vector<1x128xf32> to vector<16x128xf32>
    %20 = arith.addf %17, %19 : vector<16x128xf32>
    %cst_14 = arith.constant 0.000000e+00 : f32
    %21 = vector.broadcast %cst_14 : f32 to vector<16x128xf32>
    %22 = arith.maximumf %20, %21 : vector<16x128xf32>
    %c0_15 = arith.constant 0 : index
    %c0_16 = arith.constant 0 : index
    %c0_17 = arith.constant 0 : index
    %23 = vector.load %arg8[%c0_15, %c0_16, %c0_17] : memref<1x16x128xf32, #tpu.memory_space<vmem>>, vector<1x16x128xf32>
    %24 = vector.shape_cast %23 : vector<1x16x128xf32> to vector<16x128xf32>
    %25 = vector.shape_cast %22 : vector<16x128xf32> to vector<1x16x128xf32>
    tpu.vector_store %arg8[%c0_15, %c0_16, %c0_17], %25 {strides = array<i32>} : memref<1x16x128xf32, #tpu.memory_space<vmem>>, vector<1x16x128xf32>,
    %cst_18 = arith.constant 0.000000e+00 : f32
    %26 = vector.broadcast %cst_18 : f32 to vector<1x128xf32>
    %27 = tpu.concatenate %26, %22, %26 in 0 : vector<1x128xf32>, vector<16x128xf32>, vector<1x128xf32> -> vector<18x128xf32>
    %28 = vector.extract_strided_slice %27 {offsets = [0, 0], sizes = [16, 128], strides = [1, 1]} : vector<18x128xf32> to vector<16x128xf32>
    %c0_19 = arith.constant 0 : index
    %c0_20 = arith.constant 0 : index
    %c0_21 = arith.constant 0 : index
    %29 = vector.load %arg4[%c0_19, %c0_20, %c0_21] : memref<3x128x256xf32, #tpu.memory_space<vmem>>, vector<1x128x256xf32>
    %30 = vector.shape_cast %29 : vector<1x128x256xf32> to vector<128x256xf32>
    %cst_22 = arith.constant dense<0.000000e+00> : vector<16x256xf32>
    %31 = tpu.matmul %28, %30, %cst_22 {dimension_numbers = #tpu.dot_dimension_numbers<[1], [0], [0], [1], [0, 0, 1, 1], [], []>} : vector<16x128xf32>, vector<128x256xf32>, vector<16x256xf32> -> vector<16x256xf32>
    %32 = vector.extract_strided_slice %27 {offsets = [1, 0], sizes = [16, 128], strides = [1, 1]} : vector<18x128xf32> to vector<16x128xf32>
    %c1_23 = arith.constant 1 : index
    %c0_24 = arith.constant 0 : index
    %c0_25 = arith.constant 0 : index
    %33 = vector.load %arg4[%c1_23, %c0_24, %c0_25] : memref<3x128x256xf32, #tpu.memory_space<vmem>>, vector<1x128x256xf32>
    %34 = vector.shape_cast %33 : vector<1x128x256xf32> to vector<128x256xf32>
    %cst_26 = arith.constant dense<0.000000e+00> : vector<16x256xf32>
    %35 = tpu.matmul %32, %34, %cst_26 {dimension_numbers = #tpu.dot_dimension_numbers<[1], [0], [0], [1], [0, 0, 1, 1], [], []>} : vector<16x128xf32>, vector<128x256xf32>, vector<16x256xf32> -> vector<16x256xf32>
    %36 = arith.addf %31, %35 : vector<16x256xf32>
    %37 = vector.extract_strided_slice %27 {offsets = [2, 0], sizes = [16, 128], strides = [1, 1]} : vector<18x128xf32> to vector<16x128xf32>
    %c2_27 = arith.constant 2 : index
    %c0_28 = arith.constant 0 : index
    %c0_29 = arith.constant 0 : index
    %38 = vector.load %arg4[%c2_27, %c0_28, %c0_29] : memref<3x128x256xf32, #tpu.memory_space<vmem>>, vector<1x128x256xf32>
    %39 = vector.shape_cast %38 : vector<1x128x256xf32> to vector<128x256xf32>
    %cst_30 = arith.constant dense<0.000000e+00> : vector<16x256xf32>
    %40 = tpu.matmul %37, %39, %cst_30 {dimension_numbers = #tpu.dot_dimension_numbers<[1], [0], [0], [1], [0, 0, 1, 1], [], []>} : vector<16x128xf32>, vector<128x256xf32>, vector<16x256xf32> -> vector<16x256xf32>
    %41 = arith.addf %36, %40 : vector<16x256xf32>
    %c0_31 = arith.constant 0 : index
    %c0_32 = arith.constant 0 : index
    %42 = vector.load %arg5[%c0_31, %c0_32] : memref<1x256xf32, #tpu.memory_space<vmem>>, vector<1x256xf32>
    %43 = vector.broadcast %42 : vector<1x256xf32> to vector<16x256xf32>
    %44 = arith.addf %41, %43 : vector<16x256xf32>
    %cst_33 = arith.constant 0.000000e+00 : f32
    %45 = vector.broadcast %cst_33 : f32 to vector<16x256xf32>
    %46 = arith.maximumf %44, %45 : vector<16x256xf32>
    %c0_34 = arith.constant 0 : index
    %c0_35 = arith.constant 0 : index
    %c0_36 = arith.constant 0 : index
    %47 = vector.load %arg9[%c0_34, %c0_35, %c0_36] : memref<1x16x256xf32, #tpu.memory_space<vmem>>, vector<1x16x256xf32>
    %48 = vector.shape_cast %47 : vector<1x16x256xf32> to vector<16x256xf32>
    %49 = vector.shape_cast %46 : vector<16x256xf32> to vector<1x16x256xf32>
    tpu.vector_store %arg9[%c0_34, %c0_35, %c0_36], %49 {strides = array<i32>} : memref<1x16x256xf32, #tpu.memory_space<vmem>>, vector<1x16x256xf32>,
    %c0_37 = arith.constant 0 : index
    %c0_38 = arith.constant 0 : index
    %50 = vector.load %arg6[%c0_37, %c0_38] : memref<256x128xf32, #tpu.memory_space<vmem>>, vector<256x128xf32>
    %cst_39 = arith.constant dense<0.000000e+00> : vector<16x128xf32>
    %51 = tpu.matmul %46, %50, %cst_39 {dimension_numbers = #tpu.dot_dimension_numbers<[1], [0], [0], [1], [0, 0, 1, 1], [], []>} : vector<16x256xf32>, vector<256x128xf32>, vector<16x128xf32> -> vector<16x128xf32>
    %cst_40 = arith.constant dense<0.000000e+00> : vector<128xf32>
    %52 = vector.multi_reduction <add>, %51, %cst_40 [0] : vector<16x128xf32> to vector<128xf32>
    %53 = vector.shape_cast %52 : vector<128xf32> to vector<1x128xf32>
    %c0_41 = arith.constant 0 : index
    %c0_42 = arith.constant 0 : index
    %54 = vector.load %arg7[%c0_41, %c0_42] : memref<1x128xf32, #tpu.memory_space<vmem>>, vector<1x128xf32>
    %55 = arith.addf %53, %54 : vector<1x128xf32>
    %c0_43 = arith.constant 0 : index
    %c0_44 = arith.constant 0 : index
    %c0_45 = arith.constant 0 : index
    %56 = vector.load %arg10[%c0_43, %c0_44, %c0_45] : memref<1x1x128xf32, #tpu.memory_space<vmem>>, vector<1x1x128xf32>
    %57 = vector.shape_cast %56 : vector<1x1x128xf32> to vector<1x128xf32>
    %58 = vector.shape_cast %55 : vector<1x128xf32> to vector<1x1x128xf32>
    tpu.vector_store %arg10[%c0_43, %c0_44, %c0_45], %58 {strides = array<i32>} : memref<1x1x128xf32, #tpu.memory_space<vmem>>, vector<1x1x128xf32>,
    return
  }
  func.func @transform_0(%arg0: i32) -> (i32, i32, i32) {
    %c0_i32 = arith.constant 0 : i32
    %c0_i32_0 = arith.constant 0 : i32
    %c0_i32_1 = arith.constant 0 : i32
    return %arg0, %c0_i32, %c0_i32_0 : i32, i32, i32
  }
  func.func @transform_1(%arg0: i32) -> (i32, i32, i32) {
    %c0_i32 = arith.constant 0 : i32
    %c0_i32_0 = arith.constant 0 : i32
    %c0_i32_1 = arith.constant 0 : i32
    %c0_i32_2 = arith.constant 0 : i32
    return %c0_i32, %c0_i32_0, %c0_i32_1 : i32, i32, i32
  }
  func.func @transform_2(%arg0: i32) -> (i32, i32) {
    %c0_i32 = arith.constant 0 : i32
    %c0_i32_0 = arith.constant 0 : i32
    %c0_i32_1 = arith.constant 0 : i32
    return %c0_i32, %c0_i32_0 : i32, i32
  }
  func.func @transform_3(%arg0: i32) -> (i32, i32, i32) {
    %c0_i32 = arith.constant 0 : i32
    %c0_i32_0 = arith.constant 0 : i32
    %c0_i32_1 = arith.constant 0 : i32
    %c0_i32_2 = arith.constant 0 : i32
    return %c0_i32, %c0_i32_0, %c0_i32_1 : i32, i32, i32
  }
  func.func @transform_4(%arg0: i32) -> (i32, i32) {
    %c0_i32 = arith.constant 0 : i32
    %c0_i32_0 = arith.constant 0 : i32
    %c0_i32_1 = arith.constant 0 : i32
    return %c0_i32, %c0_i32_0 : i32, i32
  }
  func.func @transform_5(%arg0: i32) -> (i32, i32) {
    %c0_i32 = arith.constant 0 : i32
    %c0_i32_0 = arith.constant 0 : i32
    %c0_i32_1 = arith.constant 0 : i32
    return %c0_i32, %c0_i32_0 : i32, i32
  }
  func.func @transform_6(%arg0: i32) -> (i32, i32) {
    %c0_i32 = arith.constant 0 : i32
    %c0_i32_0 = arith.constant 0 : i32
    %c0_i32_1 = arith.constant 0 : i32
    return %c0_i32, %c0_i32_0 : i32, i32
  }
  func.func @transform_7(%arg0: i32) -> (i32, i32, i32) {
    %c0_i32 = arith.constant 0 : i32
    %c0_i32_0 = arith.constant 0 : i32
    %c0_i32_1 = arith.constant 0 : i32
    return %arg0, %c0_i32, %c0_i32_0 : i32, i32, i32
  }
  func.func @transform_8(%arg0: i32) -> (i32, i32, i32) {
    %c0_i32 = arith.constant 0 : i32
    %c0_i32_0 = arith.constant 0 : i32
    %c0_i32_1 = arith.constant 0 : i32
    return %arg0, %c0_i32, %c0_i32_0 : i32, i32, i32
  }
  func.func @transform_9(%arg0: i32) -> (i32, i32, i32) {
    %c0_i32 = arith.constant 0 : i32
    %c0_i32_0 = arith.constant 0 : i32
    %c0_i32_1 = arith.constant 0 : i32
    return %arg0, %c0_i32, %c0_i32_0 : i32, i32, i32
  }
}

</mosaic_0001>

<bundles_post_ra>
// kernel: ssl_model_forward.1
= control target key start
LH: loop header
LB: loop body
LE: loop exit
PB: predicated region body
PF: predicated region fallthrough
CT: control target
= control target key end

     0   :  { %15 = vsyncpa [#allocation3], 0  ;;  %s2504_s0 = inlined_call_operand.vmem [shape: f32[2,16,64], index: 0, kind: input, shape index: {}]   ;;  %s2505_s1 = inlined_call_operand.vmem [shape: f32[3,64,128], index: 1, kind: input, shape index: {}]   ;;  %s2506_s2 = inlined_call_operand.vmem [shape: f32[1,128], index: 2, kind: input, shape index: {}]   ;;  %s2507_s3 = inlined_call_operand.vmem [shape: f32[3,128,256], index: 3, kind: input, shape index: {}]   ;;  %s2508_s4 = inlined_call_operand.vmem [shape: f32[1,256], index: 4, kind: input, shape index: {}]   ;;  %s2509_s5 = inlined_call_operand.vmem [shape: f32[256,128], index: 5, kind: input, shape index: {}]   ;;  %s2510_s6 = inlined_call_operand.vmem [shape: f32[1,128], index: 6, kind: input, shape index: {}]   ;;  %s2511_s7 = inlined_call_operand.vmem [shape: f32[2,16,128], index: 7, kind: output, shape index: {0}]   ;;  %s2512_s8 = inlined_call_operand.vmem [shape: f32[2,16,256], index: 8, kind: output, shape index: {1}]   ;;  %s2513_s9 = inlined_call_operand.hbm [shape: f32[2,1,128], index: 9, kind: output, shape index: {2}]  }
   0x1   :  { %17 = vsyncpa [#allocation3 + $0x1], 0  ;;  %s1868_s30 = smov 0   ;;  %s1870_s10 = smov 0  }
   0x2   :  { %s1872_s11 = smov 0   ;;  %s1874_s12 = smov 0  }
   0x3 LB: > { %s1889_s13 = sadd.s32 4294967295, %s1814_s12   ;;  %s1294_s14 = sadd.s32 4294967294, %s1814_s12   ;;  %s1814_s12 = sphi %s1874_s12, %s2521_s12   ;;  %s1810_s11 = sphi %s1872_s11, %s2520_s11   ;;  %s1806_s10 = sphi %s1870_s10, %s2519_s10   ;;  %s1802_s30 = sphi %s1868_s30, %s2518_s30  }
   0x4   : > { %s1893_s15 = sadd.s32 1, %s1814_s12   ;;  %s234_s16 = sadd.s32 1, %s1810_s11 }
   0x5   : > { %s231_s17 = ssub.s32 %s1814_s12, %s1893_s15  ;;  %p244_p0 = scmp.ne.s32.totalorder %s1810_s11, %s1806_s10 }
   0x6   : > { %p232_p1 = scmp.eq.s32.totalorder %s231_s17, 0  ;;  %p245_p2 = scmp.eq.s32.totalorder %s1889_s13, 1 }
   0x7   : > { %p250_p3 = scmp.ne.s32.totalorder %s1806_s10, %s1802_s30  ;;  %p251_p4 = scmp.eq.s32.totalorder %s1294_s14, 1 }
   0x8   : > { %s1904_s18 = scalar_select %p232_p1, %s1810_s11, %s234_s16  }
   0x9   : > { %p1906_p5 = por %p245_p2, %p244_p0  ;;  %p1910_p6 = por %p251_p4, %p250_p3 }
   0xa   : > { %p1297_p7 = scmp.ge.s32.totalorder %s1814_s12, 1  ;;  %p295_p8 = scmp.lt.s32.totalorder %s1814_s12, 3 }
   0xc   : > { %p296_p9 = pnand %p1297_p7, %p295_p8 }
   0xd   : > { %v1304_v0 = vld [vmem:[%s2505_s1 + $0x40] sm:$0xff] (!%p296_p9)  ;;  %v1305_v1 = vld [vmem:[%s2505_s1 + $0x48] sm:$0xff] (!%p296_p9)  ;;  %v1306_v2 = vld [vmem:[%s2505_s1 + $0x50] sm:$0xff] (!%p296_p9)  ;;  %p340_p10 = scmp.lt.s32.totalorder (!%p296_p9), %s1889_s13, 1  ;;  %vm359_vm0 = vcmask (!%p296_p9), 1040384   ;;  %vm386_vm1 = vcmask (!%p296_p9), 1046528  }
   0xe   : > { %299 = sbr.rel (%p296_p9) target bundleno = 819 (0x333), region = 48  ;;  %v1524_v3 = vpack.c.bf16 (!%p296_p9), %v1305_v1, %v1304_v0  ;;  %v1307_v4 = vld [vmem:[%s2505_s1 + $0x58] sm:$0xff] (!%p296_p9)  ;;  %v1308_v6 = vld [vmem:[%s2505_s1 + $0x60] sm:$0xff] (!%p296_p9)  ;;  %v1309_v7 = vld [vmem:[%s2505_s1 + $0x68] sm:$0xff] (!%p296_p9)  ;;  %vm392_vm2 = vcmask (!%p296_p9), 523264   ;;  %vm560_vm3 = vcmask (!%p296_p9), 1045504  }
   0xf   : > { %v1528_v5 = vpack.c.bf16 (!%p296_p9), %v1307_v4, %v1306_v2  ;;  %v1532_v8 = vpack.c.bf16 (!%p296_p9), %v1309_v7, %v1308_v6  ;;  %v1310_v9 = vld [vmem:[%s2505_s1 + $0x70] sm:$0xff] (!%p296_p9)  ;;  %v1311_v10 = vld [vmem:[%s2505_s1 + $0x78] sm:$0xff] (!%p296_p9)  ;;  %v367_v15 = vld [vmem:[%s2505_s1] sm:$0xff] (!%p296_p9)  ;;  %s1393_s24 = sshll.u32 (!%p296_p9), %s1889_s13, 4 }
  0x10   : > { %1525 = vmatprep.subr.bf16.mxu0 (!%p296_p9), %v1524_v3  ;;  %v1328_v16 = vld [vmem:[%s2507_s3 + $0x108] sm:$0xff] (!%p296_p9)  ;;  %v1536_v17 = vpack.c.bf16 (!%p296_p9), %v1311_v10, %v1310_v9  ;;  %v1330_v21 = vld [vmem:[%s2507_s3 + $0x118] sm:$0xff] (!%p296_p9)  ;;  %v1327_v22 = vld [vmem:[%s2507_s3 + $0x100] sm:$0xff] (!%p296_p9) }
  0x11   : > { %1527 = vmatpush3.bf16.msra.mxu0 (!%p296_p9), %v1524_v3  ;;  %v1329_v23 = vld [vmem:[%s2507_s3 + $0x110] sm:$0xff] (!%p296_p9)  ;;  %v368_v26 = vld [vmem:[%s2505_s1 + $0x8] sm:$0xff] (!%p296_p9)  ;;  %v1334_v28 = vld [vmem:[%s2507_s3 + $0x138] sm:$0xff] (!%p296_p9)  ;;  %v1572_v29 = vpack.c.bf16 (!%p296_p9), %v1330_v21, %v1328_v16 }
  0x12   : > { %1529 = vmatprep.subr.bf16.mxu0 (!%p296_p9), %v1528_v5  ;;  %v1332_v27 = vld [vmem:[%s2507_s3 + $0x128] sm:$0xff] (!%p296_p9)  ;;  %v1574_v30 = vpack.c.bf16 (!%p296_p9), %v1329_v23, %v1327_v22  ;;  %v1331_v34 = vld [vmem:[%s2507_s3 + $0x120] sm:$0xff] (!%p296_p9)  ;;  %v1333_v35 = vld [vmem:[%s2507_s3 + $0x130] sm:$0xff] (!%p296_p9)  ;;  %v1540_v36 = vpack.c.bf16 (!%p296_p9), %v368_v26, %v367_v15 }
  0x13   : > { %v1576_v33 = vpack.c.bf16 (!%p296_p9), %v1334_v28, %v1332_v27  ;;  %v369_v37 = vld [vmem:[%s2505_s1 + $0x10] sm:$0xff] (!%p296_p9)  ;;  %v370_v38 = vld [vmem:[%s2505_s1 + $0x18] sm:$0xff] (!%p296_p9)  ;;  %1573 = vmatprep.subr.bf16.mxu1 (!%p296_p9), %v1572_v29  ;;  %v1336_v39 = vld [vmem:[%s2507_s3 + $0x148] sm:$0xff] (!%p296_p9)  ;;  %v1578_v41 = vpack.c.bf16 (!%p296_p9), %v1333_v35, %v1331_v34 }
  0x14   : > { %v1338_v40 = vld [vmem:[%s2507_s3 + $0x158] sm:$0xff] (!%p296_p9)  ;;  %1575 = vmatpush1.bf16.msra.mxu1 (!%p296_p9), %v1574_v30  ;;  %v1335_v43 = vld [vmem:[%s2507_s3 + $0x140] sm:$0xff] (!%p296_p9)  ;;  %v1337_v44 = vld [vmem:[%s2507_s3 + $0x150] sm:$0xff] (!%p296_p9)  ;;  %v1544_v45 = vpack.c.bf16 (!%p296_p9), %v370_v38, %v369_v37 }
  0x15   : > { %s1936_s21 = scalar_select %p340_p10, %s1889_s13, 1  ;;  %1531 = vmatpush3.bf16.msra.mxu0 %v1528_v5  ;;  %1577 = vmatprep.subr.bf16.mxu1 %v1576_v33  ;;  %v1580_v46 = vpack.c.bf16 %v1338_v40, %v1336_v39  ;;  %v1340_v47 = vld [vmem:[%s2507_s3 + $0x168] sm:$0xff]  ;;  %v1342_v48 = vld [vmem:[%s2507_s3 + $0x178] sm:$0xff]  ;;  %v371_v49 = vld [vmem:[%s2505_s1 + $0x20] sm:$0xff]  ;;  %v1582_v51 = vpack.c.bf16 %v1337_v44, %v1335_v43  ;;  %v1816_v40 = vmov 0.0  }
  0x16   : > { %1533 = vmatprep.subr.bf16.mxu0 %v1532_v8  ;;  %v372_v50 = vld [vmem:[%s2505_s1 + $0x28] sm:$0xff]  ;;  %v1584_v52 = vpack.c.bf16 %v1342_v48, %v1340_v47  ;;  %v1339_v53 = vld [vmem:[%s2507_s3 + $0x160] sm:$0xff]  ;;  %v1341_v54 = vld [vmem:[%s2507_s3 + $0x170] sm:$0xff]  ;;  %808 = vmatprep.mubr.f32.mxu1 %v1816_v40  ;;  %s1817_s13 = smov [#allocation2]  }
  0x17   : > { %s2514_s22 = sshll.u32 %s1936_s21, 4  ;;  %v1548_v55 = vpack.c.bf16 %v372_v50, %v371_v49  ;;  %v1344_v56 = vld [vmem:[%s2507_s3 + $0x188] sm:$0xff]  ;;  %v1346_v57 = vld [vmem:[%s2507_s3 + $0x198] sm:$0xff]  ;;  %v373_v58 = vld [vmem:[%s2505_s1 + $0x30] sm:$0xff]  ;;  %v1586_v60 = vpack.c.bf16 %v1341_v54, %v1339_v53  ;;  %s2517_s29 = sshll.u32 %s1936_s21, 4 }
  0x18   : > { %s344_s27 = scalar_lea.vmem %s2504_s0, %s2514_s22  ;;  %1579 = vmatpush1.bf16.msra.mxu1 %v1578_v41  ;;  %v374_v59 = vld [vmem:[%s2505_s1 + $0x38] sm:$0xff]  ;;  %v1588_v61 = vpack.c.bf16 %v1346_v57, %v1344_v56  ;;  %v1343_v62 = vld [vmem:[%s2507_s3 + $0x180] sm:$0xff]  ;;  %v1345_v63 = vld [vmem:[%s2507_s3 + $0x190] sm:$0xff]  ;;  %s349_s17 = scalar_lea.vmem %s2511_s7, %s2517_s29 }
  0x19   : > { %v355_v11 = vld [vmem:[%s344_s27] sm:$0xff]  ;;  %v356_v12 = vld [vmem:[%s344_s27 + $0x8] sm:$0xff]  ;;  %1535 = vmatpush3.bf16.msra.mxu0 %v1532_v8  ;;  %1581 = vmatprep.subr.bf16.mxu1 %v1580_v46  ;;  %v1552_v0 = vpack.c.bf16 %v374_v59, %v373_v58  ;;  %v1350_v2 = vld [vmem:[%s2507_s3 + $0x1b8] sm:$0xff]  ;;  %v1590_v5 = vpack.c.bf16 %v1345_v63, %v1343_v62  ;;  %s1398_s22 = sshll.u32 %s1936_s21, 5  ;;  %s338_s21 = sand.u32 1, %s1806_s10  }
  0x1a   : > { %v360_v13 = vrot.slane %v355_v11, 7  ;;  %v361_v14 = vrot.slane %v356_v12, 7  ;;  %1537 = vmatprep.subr.bf16.mxu0 %v1536_v17  ;;  %v1348_v1 = vld [vmem:[%s2507_s3 + $0x1a8] sm:$0xff]  ;;  %v1316_v3 = vld [vmem:[%s2505_s1 + $0x80] sm:$0xff]  ;;  %v1318_v10 = vld [vmem:[%s2505_s1 + $0x90] sm:$0xff]  ;;  %s354_s16 = scalar_lea.vmem %s2512_s8, %s1398_s22  ;;  %s339_s25 = scalar_lea.vmem [#allocation2], %s338_s21 }
  0x1b   : > { %v1317_v4 = vld [vmem:[%s2505_s1 + $0x88] sm:$0xff]  ;;  %v1592_v6 = vpack.c.bf16 %v1350_v2, %v1348_v1  ;;  %v1319_v11 = vld [vmem:[%s2505_s1 + $0x98] sm:$0xff]  ;;  %v1347_v23 = vld [vmem:[%s2507_s3 + $0x1a0] sm:$0xff]  ;;  %s1189_s26 = sshll.u32 %s339_s25, 4  ;;  %s2462_s22 = scalar_lea.hbm %s2513_s9, %s1393_s24  ;;  %s2464_s26 = int_to_ptr.vmem [resolvable:$true] %s1189_s26 }
  0x1c   : > { %v1957_v18 = vsel %vm359_vm0, %v360_v13, %v361_v14  ;;  %v1960_v19 = vsel %vm359_vm0, 0.0, %v360_v13  ;;  %v1963_v20 = vsel %vm359_vm0, %v361_v14, 0.0  ;;  %1583 = vmatpush1.bf16.msra.mxu1 %v1582_v51  ;;  %v1556_v7 = vpack.c.bf16 %v1317_v4, %v1316_v3  ;;  %v1320_v14 = vld [vmem:[%s2505_s1 + $0xa0] sm:$0xff]  ;;  %v1321_v15 = vld [vmem:[%s2505_s1 + $0xa8] sm:$0xff]  ;;  %v1354_v26 = vld [vmem:[%s2507_s3 + $0x1d8] sm:$0xff]  ;;  %s1171_s29 = scalar_lea.sflag [#allocation3], %s338_s21 }
  0x1d   : > { %v387_v24 = vrot.slane %v1960_v19, 1  ;;  %v388_v25 = vrot.slane %v1957_v18, 1  ;;  %v390_v32 = vrot.slane %v1963_v20, 1  ;;  %1539 = vmatpush3.bf16.msra.mxu0 %v1536_v17  ;;  %1585 = vmatprep.subr.bf16.mxu1 %v1584_v52  ;;  %v561_v8 = vrot.slane %v1960_v19, 2  ;;  %v1322_v17 = vld [vmem:[%s2505_s1 + $0xb0] sm:$0xff]  ;;  %v1351_v28 = vld [vmem:[%s2507_s3 + $0x1c0] sm:$0xff]  ;;  %vm1359_vm4 = vmneg %vm359_vm0 }
  0x1e   : > { %1541 = vmatprep.subr.bf16.mxu0 %v1540_v36  ;;  %v562_v9 = vrot.slane %v1957_v18, 2  ;;  %v1560_v12 = vpack.c.bf16 %v1319_v11, %v1318_v10  ;;  %v1564_v16 = vpack.c.bf16 %v1321_v15, %v1320_v14  ;;  %v564_v22 = vrot.slane %v1963_v20, 2  ;;  %v1352_v20 = vld [vmem:[%s2507_s3 + $0x1c8] sm:$0xff]  ;;  %v1353_v29 = vld [vmem:[%s2507_s3 + $0x1d0] sm:$0xff]  ;;  %v1355_v34 = vld [vmem:[%s2507_s3 + $0x1e0] sm:$0xff]  ;;  %s1752_s14 = scalar_lea.vmem %s2464_s26, 16 }
  0x1f   : > { %v389_v31 = vsel %vm386_vm1, %v387_v24, %v388_v25  ;;  %v391_v42 = vsel %vm386_vm1, %v388_v25, %v390_v32  ;;  %v1349_v24 = vld [vmem:[%s2507_s3 + $0x1b0] sm:$0xff]  ;;  %v1596_v27 = vpack.c.bf16 %v1354_v26, %v1352_v20  ;;  %v1598_v30 = vpack.c.bf16 %v1353_v29, %v1351_v28  ;;  %v1358_v32 = vld [vmem:[%s2507_s3 + $0x1f8] sm:$0xff]  ;;  %v671_v37 = vld [vmem:[%s2507_s3 + $0x8] sm:$0xff]  ;;  %p1753_p11 = scmp.ne.s32.totalorder %s2464_s26, %s1752_s14 }
  0x20   : > { %1483 = vmatprep.mubr.msk.f32.mxu0 %vm392_vm2, %v389_v31  ;;  %1587 = vmatpush1.bf16.msra.mxu1 %v1586_v60  ;;  %v563_v13 = vsel %vm560_vm3, %v561_v8, %v562_v9  ;;  %v1594_v25 = vpack.c.bf16 %v1349_v24, %v1347_v23  ;;  %v1356_v31 = vld [vmem:[%s2507_s3 + $0x1e8] sm:$0xff]  ;;  %v1357_v35 = vld [vmem:[%s2507_s3 + $0x1f0] sm:$0xff]  ;;  %v673_v38 = vld [vmem:[%s2507_s3 + $0x18] sm:$0xff] }
  0x21   : > { %1484 = vmatmul.mubr.msk.f32.vlgmr.msra.gmra.mrb[0].mxu0 %vm392_vm2, %v391_v42  ;;  %1589 = vmatprep.subr.bf16.mxu1 %v1588_v61  ;;  %v1600_v33 = vpack.c.bf16 %v1358_v32, %v1356_v31  ;;  %v1604_v39 = vpack.c.bf16 %v673_v38, %v671_v37  ;;  %v1059_v41 = vld [vmem:[%s2509_s5 + $0x80] sm:$0xff]  ;;  %v1060_v42 = vld [vmem:[%s2509_s5 + $0x88] sm:$0xff]  ;;  %v1061_v46 = vld [vmem:[%s2509_s5 + $0x90] sm:$0xff]  ;;  %p1754_p12 = pnand %p1753_p11, %p1906_p5 }
  0x22   : > { %1543 = vmatpush3.bf16.msra.mxu0 %v1540_v36  ;;  %1502 = vmatprep.mubr.msk.f32.mxu0 %vm392_vm2, %v1960_v19  ;;  %v1323_v19 = vld [vmem:[%s2505_s1 + $0xb8] sm:$0xff]  ;;  %v1602_v36 = vpack.c.bf16 %v1357_v35, %v1355_v34  ;;  %v1043_v43 = vld [vmem:[%s2509_s5] sm:$0xff]  ;;  %v1668_v44 = vpack.c.bf16 %v1060_v42, %v1059_v41  ;;  %v1045_v50 = vld [vmem:[%s2509_s5 + $0x10] sm:$0xff] }
  0x23   : > { %1545 = vmatprep.subr.bf16.mxu0 %v1544_v45  ;;  %v1568_v21 = vpack.c.bf16 %v1323_v19, %v1322_v17  ;;  %v1062_v47 = vld [vmem:[%s2509_s5 + $0x98] sm:$0xff]  ;;  %v1063_v52 = vld [vmem:[%s2509_s5 + $0xa0] sm:$0xff]  ;;  %v1064_v53 = vld [vmem:[%s2509_s5 + $0xa8] sm:$0xff]  ;;  %p1755_p13 = pneg %p1754_p12 }
  0x24   : > { %1591 = vmatpush1.bf16.msra.mxu1 %v1590_v5  ;;  %v1672_v49 = vpack.c.bf16 %v1062_v47, %v1061_v46  ;;  %v1046_v51 = vld [vmem:[%s2509_s5 + $0x18] sm:$0xff]  ;;  %v1047_v56 = vld [vmem:[%s2509_s5 + $0x20] sm:$0xff]  ;;  %v1048_v57 = vld [vmem:[%s2509_s5 + $0x28] sm:$0xff] }
  0x25   : > { %1593 = vmatprep.subr.bf16.mxu1 %v1592_v6  ;;  %v1674_v54 = vpack.c.bf16 %v1046_v51, %v1045_v50  ;;  %v1065_v58 = vld [vmem:[%s2509_s5 + $0xb0] sm:$0xff]  ;;  %v1066_v59 = vld [vmem:[%s2509_s5 + $0xb8] sm:$0xff]  ;;  %v1678_v60 = vpack.c.bf16 %v1048_v57, %v1047_v56  ;;  %v1068_v1 = vld [vmem:[%s2509_s5 + $0xc8] sm:$0xff] }
  0x26   : > { %1547 = vmatpush3.bf16.msra.mxu0 %v1544_v45  ;;  %v1044_v45 = vld [vmem:[%s2509_s5 + $0x8] sm:$0xff]  ;;  %v1680_v61 = vpack.c.bf16 %v1066_v59, %v1065_v58  ;;  %v1049_v62 = vld [vmem:[%s2509_s5 + $0x30] sm:$0xff]  ;;  %v1050_v63 = vld [vmem:[%s2509_s5 + $0x38] sm:$0xff] }
  0x27   : > { %1549 = vmatprep.subr.bf16.mxu0 %v1548_v55  ;;  %v1670_v48 = vpack.c.bf16 %v1044_v45, %v1043_v43  ;;  %v1682_v2 = vpack.c.bf16 %v1050_v63, %v1049_v62  ;;  %v1051_v4 = vld [vmem:[%s2509_s5 + $0x40] sm:$0xff]  ;;  %v1052_v5 = vld [vmem:[%s2509_s5 + $0x48] sm:$0xff]  ;;  %v1069_v6 = vld [vmem:[%s2509_s5 + $0xd0] sm:$0xff] }
  0x28   : > { %1595 = vmatpush1.bf16.msra.mxu1 %v1594_v25  ;;  %v1686_v8 = vpack.c.bf16 %v1052_v5, %v1051_v4  ;;  %v1053_v10 = vld [vmem:[%s2509_s5 + $0x50] sm:$0xff]  ;;  %v1054_v11 = vld [vmem:[%s2509_s5 + $0x58] sm:$0xff]  ;;  %v670_v24 = vld [vmem:[%s2507_s3] sm:$0xff] }
  0x29   : > { %1597 = vmatprep.subr.bf16.mxu1 %v1596_v27  ;;  %v1690_v14 = vpack.c.bf16 %v1054_v11, %v1053_v10  ;;  %v672_v25 = vld [vmem:[%s2507_s3 + $0x10] sm:$0xff]  ;;  %v675_v29 = vld [vmem:[%s2507_s3 + $0x28] sm:$0xff]  ;;  %v674_v41 = vld [vmem:[%s2507_s3 + $0x20] sm:$0xff] }
  0x2a   : > { %1551 = vmatpush3.bf16.msra.mxu0 %v1548_v55  ;;  %v1676_v55 = vpack.c.bf16 %v1064_v53, %v1063_v52  ;;  %v1606_v28 = vpack.c.bf16 %v672_v25, %v670_v24  ;;  %v676_v42 = vld [vmem:[%s2507_s3 + $0x30] sm:$0xff]  ;;  %v679_v45 = vld [vmem:[%s2507_s3 + $0x48] sm:$0xff]  ;;  %v681_v46 = vld [vmem:[%s2507_s3 + $0x58] sm:$0xff] }
  0x2b   : > { %1553 = vmatprep.subr.bf16.mxu0 %v1552_v0  ;;  %v1612_v50 = vpack.c.bf16 %v681_v46, %v679_v45  ;;  %v678_v51 = vld [vmem:[%s2507_s3 + $0x40] sm:$0xff]  ;;  %v680_v52 = vld [vmem:[%s2507_s3 + $0x50] sm:$0xff]  ;;  %v683_v53 = vld [vmem:[%s2507_s3 + $0x68] sm:$0xff] }
  0x2c   : > { %1599 = vmatpush1.bf16.msra.mxu1 %v1598_v30  ;;  %v677_v30 = vld [vmem:[%s2507_s3 + $0x38] sm:$0xff]  ;;  %v682_v57 = vld [vmem:[%s2507_s3 + $0x60] sm:$0xff]  ;;  %v684_v58 = vld [vmem:[%s2507_s3 + $0x70] sm:$0xff] }
  0x2d   : > { %1601 = vmatprep.subr.bf16.mxu1 %v1600_v33  ;;  %v687_v59 = vld [vmem:[%s2507_s3 + $0x88] sm:$0xff]  ;;  %v686_v63 = vld [vmem:[%s2507_s3 + $0x80] sm:$0xff]  ;;  %v1363_v25 = vld [vmem:[%s2507_s3 + $0x210] sm:$0xff] }
  0x2e   : > { %1555 = vmatpush3.bf16.msra.mxu0 %v1552_v0  ;;  %v1067_v0 = vld [vmem:[%s2509_s5 + $0xc0] sm:$0xff]  ;;  %v1378_v45 = vld [vmem:[%s2507_s3 + $0x288] sm:$0xff] }
  0x2f   : > { %1557 = vmatprep.subr.bf16.mxu0 %v1556_v7  ;;  %v1684_v3 = vpack.c.bf16 %v1068_v1, %v1067_v0  ;;  %v688_v0 = vld [vmem:[%s2507_s3 + $0x90] sm:$0xff]  ;;  %v691_v1 = vld [vmem:[%s2507_s3 + $0xa8] sm:$0xff]  ;;  %v690_v5 = vld [vmem:[%s2507_s3 + $0xa0] sm:$0xff] }
  0x30   : > { %1603 = vmatpush1.bf16.msra.mxu1 %v1602_v36  ;;  %v694_v11 = vld [vmem:[%s2507_s3 + $0xc0] sm:$0xff] }
  0x31   : > { %1503 = vmatmul.mubr.msk.f32.vlgmr.msra.gmra.mrb[0].mxu0 %vm392_vm2, %v1957_v18  ;;  %v565_v18 = vsel %vm560_vm3, %v562_v9, %v564_v22  ;;  %1605 = vmatprep.subr.bf16.mxu1 %v1604_v39  ;;  %v1608_v39 = vpack.c.bf16 %v677_v30, %v675_v29  ;;  %v1361_v24 = vld [vmem:[%s2507_s3 + $0x200] sm:$0xff] }
  0x32   : > { %1559 = vmatpush3.bf16.msra.mxu0 %v1556_v7  ;;  %1521 = vmatprep.mubr.msk.f32.mxu0 %vm392_vm2, %v563_v13  ;;  %v1070_v7 = vld [vmem:[%s2509_s5 + $0xd8] sm:$0xff]  ;;  %v1072_v13 = vld [vmem:[%s2509_s5 + $0xe8] sm:$0xff]  ;;  %v1365_v30 = vld [vmem:[%s2507_s3 + $0x220] sm:$0xff] }
  0x33   : > { %1561 = vmatprep.subr.bf16.mxu0 %v1560_v12  ;;  %v1688_v9 = vpack.c.bf16 %v1070_v7, %v1069_v6  ;;  %v692_v6 = vld [vmem:[%s2507_s3 + $0xb0] sm:$0xff]  ;;  %v695_v7 = vld [vmem:[%s2507_s3 + $0xc8] sm:$0xff] }
  0x36   : > { %1563 = vmatpush3.bf16.msra.mxu0 %v1560_v12  ;;  %v1071_v12 = vld [vmem:[%s2509_s5 + $0xe0] sm:$0xff] }
  0x37   : > { %1565 = vmatprep.subr.bf16.mxu0 %v1564_v16  ;;  %v1692_v15 = vpack.c.bf16 %v1072_v13, %v1071_v12  ;;  %v696_v12 = vld [vmem:[%s2507_s3 + $0xd0] sm:$0xff]  ;;  %v699_v13 = vld [vmem:[%s2507_s3 + $0xe8] sm:$0xff] }
  0x3a   : > { %1567 = vmatpush3.bf16.msra.mxu0 %v1564_v16  ;;  %v1326_v16 = vld [vmem:[%s2506_s2] ss:$0 sm:$0xff] }
  0x3b   : > { %1569 = vmatprep.subr.bf16.mxu0 %v1568_v21 }
  0x3e   : > { %1571 = vmatpush3.bf16.msra.mxu0 %v1568_v21 }
  0x3f   : > { %1669 = vmatprep.subr.bf16.mxu0 %v1668_v44 }
  0x41   : > { %1522 = vmatmul.mubr.msk.f32.vlgmr.msra.gmra.mrb[0].mxu0 %vm392_vm2, %v565_v18 }
  0x42   : > { %1671 = vmatpush3.bf16.msra.mxu0 %v1670_v48 }
  0x43   : > { %1673 = vmatprep.subr.bf16.mxu0 %v1672_v49  ;;  %v1610_v49 = vpack.c.bf16 %v676_v42, %v674_v41 }
  0x46   : > { %1675 = vmatpush3.bf16.msra.mxu0 %v1674_v54  ;;  %v685_v54 = vld [vmem:[%s2507_s3 + $0x78] sm:$0xff] }
  0x47   : > { %1677 = vmatprep.subr.bf16.mxu0 %v1676_v55  ;;  %v1614_v55 = vpack.c.bf16 %v680_v52, %v678_v51  ;;  %v1616_v56 = vpack.c.bf16 %v685_v54, %v683_v53  ;;  %v1379_v51 = vld [vmem:[%s2507_s3 + $0x290] sm:$0xff]  ;;  %v1382_v52 = vld [vmem:[%s2507_s3 + $0x2a8] sm:$0xff]  ;;  %v1384_v53 = vld [vmem:[%s2507_s3 + $0x2b8] sm:$0xff] }
  0x4a   : > { %1679 = vmatpush3.bf16.msra.mxu0 %v1678_v60  ;;  %v689_v60 = vld [vmem:[%s2507_s3 + $0x98] sm:$0xff] }
  0x4b   : > { %1681 = vmatprep.subr.bf16.mxu0 %v1680_v61  ;;  %v1618_v61 = vpack.c.bf16 %v684_v58, %v682_v57  ;;  %v1620_v62 = vpack.c.bf16 %v689_v60, %v687_v59  ;;  %v1383_v57 = vld [vmem:[%s2507_s3 + $0x2b0] sm:$0xff]  ;;  %v1386_v58 = vld [vmem:[%s2507_s3 + $0x2c8] sm:$0xff]  ;;  %v1388_v59 = vld [vmem:[%s2507_s3 + $0x2d8] sm:$0xff] }
  0x4e   : > { %1683 = vmatpush3.bf16.msra.mxu0 %v1682_v2  ;;  %v693_v2 = vld [vmem:[%s2507_s3 + $0xb8] sm:$0xff] }
  0x4f   : > { %1685 = vmatprep.subr.bf16.mxu0 %v1684_v3  ;;  %v1622_v3 = vpack.c.bf16 %v688_v0, %v686_v63  ;;  %v1624_v4 = vpack.c.bf16 %v693_v2, %v691_v1  ;;  %v1387_v63 = vld [vmem:[%s2507_s3 + $0x2d0] sm:$0xff]  ;;  %v1390_v0 = vld [vmem:[%s2507_s3 + $0x2e8] sm:$0xff]  ;;  %v1392_v1 = vld [vmem:[%s2507_s3 + $0x2f8] sm:$0xff] }
  0x52   : > { %1687 = vmatpush3.bf16.msra.mxu0 %v1686_v8  ;;  %v697_v8 = vld [vmem:[%s2507_s3 + $0xd8] sm:$0xff] }
  0x53   : > { %1689 = vmatprep.subr.bf16.mxu0 %v1688_v9  ;;  %v1626_v9 = vpack.c.bf16 %v692_v6, %v690_v5  ;;  %v1628_v10 = vpack.c.bf16 %v697_v8, %v695_v7  ;;  %v1391_v5 = vld [vmem:[%s2507_s3 + $0x2f0] sm:$0xff]  ;;  %v1055_v7 = vld [vmem:[%s2509_s5 + $0x60] sm:$0xff]  ;;  %v1056_v8 = vld [vmem:[%s2509_s5 + $0x68] sm:$0xff] }
  0x56   : > { %1691 = vmatpush3.bf16.msra.mxu0 %v1690_v14  ;;  %v701_v14 = vld [vmem:[%s2507_s3 + $0xf8] sm:$0xff] }
  0x57   : > { %1693 = vmatprep.subr.bf16.mxu0 %v1692_v15  ;;  %v1630_v15 = vpack.c.bf16 %v696_v12, %v694_v11  ;;  %v1058_v11 = vld [vmem:[%s2509_s5 + $0x78] sm:$0xff] }
 0x114   : > { %v1523_v17 = vpop.f32.mrb[0].mxu0 }
 0x115   : > { %v655_v19 = vadd.f32 %v1523_v17, %v1326_v16  ;;  %v636_v21 = vpop.f32.mrb[1].mxu0  ;;  %v698_v17 = vld [vmem:[%s2507_s3 + $0xe0] sm:$0xff] }
 0x116   : > { %v654_v22 = vadd.f32 %v1326_v16, %v636_v21  ;;  %v1632_v16 = vpack.c.bf16 %v701_v14, %v699_v13  ;;  %v1362_v21 = vld [vmem:[%s2507_s3 + $0x208] sm:$0xff]  ;;  %v1021_v13 = vlaneseq }
 0x117   : > { %v657_v18 = vmax.f32 %v655_v19, 0.0  ;;  %v700_v19 = vld [vmem:[%s2507_s3 + $0xf0] sm:$0xff] }
 0x118   : > { %v656_v23 = vmax.f32 %v654_v22, 0.0  ;;  %v1364_v22 = vld [vmem:[%s2507_s3 + $0x218] sm:$0xff]  ;;  %v1022_v14 = vshrl.u32 %v1021_v13, 7 }
 0x119   : > { %659 = vst [vmem:[%s349_s17 + $0x8] sm:$0xff] %v657_v18  ;;  %v663_v20 = vrot.slane %v657_v18, 7  ;;  %v1634_v18 = vpack.c.bf16 %v700_v19, %v698_v17 }
 0x11a   : > { %658 = vst [vmem:[%s349_s17] sm:$0xff] %v656_v23  ;;  %v2220_v26 = vrot.slane %v656_v23, 7  ;;  %v1636_v23 = vpack.c.bf16 %v1364_v22, %v1362_v21  ;;  %v1027_v17 = vsub.s32 1, %v1022_v14 }
 0x11b   : > { %v669_v27 = vsel %vm359_vm0, %v663_v20, 0.0 }
 0x11c   : > { %v740_v31 = vrot.slane %v669_v27, 1  ;;  %v934_v32 = vrot.slane %v669_v27, 2  ;;  %v2231_v33 = vsel %vm359_vm0, %v2220_v26, %v663_v20  ;;  %v668_v34 = vsel %vm359_vm0, 0.0, %v2220_v26  ;;  %v1366_v20 = vld [vmem:[%s2507_s3 + $0x228] sm:$0xff]  ;;  %v1368_v27 = vld [vmem:[%s2507_s3 + $0x238] sm:$0xff] }
 0x11d   : > { %v932_v35 = vrot.slane %v2231_v33, 2  ;;  %v737_v36 = vrot.slane %v668_v34, 1  ;;  %v738_v37 = vrot.slane %v2231_v33, 1  ;;  %v931_v38 = vrot.slane %v668_v34, 2  ;;  %v1372_v34 = vld [vmem:[%s2507_s3 + $0x258] sm:$0xff] }
 0x11e   : > { %v1640_v29 = vpack.c.bf16 %v1368_v27, %v1366_v20 }
 0x11f   : > { %v739_v43 = vsel %vm386_vm1, %v737_v36, %v738_v37  ;;  %v741_v44 = vsel %vm386_vm1, %v738_v37, %v740_v31  ;;  %v2252_v47 = vsel %vm560_vm3, %v931_v38, %v932_v35  ;;  %v2255_v48 = vsel %vm560_vm3, %v932_v35, %v934_v32  ;;  %v1367_v31 = vld [vmem:[%s2507_s3 + $0x230] sm:$0xff]  ;;  %v1370_v32 = vld [vmem:[%s2507_s3 + $0x248] sm:$0xff]  ;;  %v1369_v37 = vld [vmem:[%s2507_s3 + $0x240] sm:$0xff] }
 0x120   : > { %809 = vmatmul.mubr.f32.vlgmr.msra.gmra.mrb[0].mxu1 %v739_v43  ;;  %v1642_v35 = vpack.c.bf16 %v1367_v31, %v1365_v30  ;;  %v1644_v36 = vpack.c.bf16 %v1372_v34, %v1370_v32  ;;  %v1371_v38 = vld [vmem:[%s2507_s3 + $0x250] sm:$0xff]  ;;  %v1373_v43 = vld [vmem:[%s2507_s3 + $0x260] sm:$0xff] }
 0x121   : > { %1607 = vmatpush1.bf16.msra.mxu1 %v1606_v28  ;;  %814 = vmatprep.mubr.f32.mxu1 %v1816_v40  ;;  %v1638_v28 = vpack.c.bf16 %v1363_v25, %v1361_v24  ;;  %v1646_v41 = vpack.c.bf16 %v1371_v38, %v1369_v37 }
 0x122   : > { %1609 = vmatprep.subr.bf16.mxu1 %v1608_v39  ;;  %v1374_v39 = vld [vmem:[%s2507_s3 + $0x268] sm:$0xff] }
 0x124   : > { %815 = vmatmul.mubr.f32.gmra.mrb[2].mxu1 %v741_v44  ;;  %v1375_v44 = vld [vmem:[%s2507_s3 + $0x270] sm:$0xff] }
 0x125   : > { %1611 = vmatpush1.bf16.msra.mxu1 %v1610_v49  ;;  %885 = vmatprep.mubr.f32.mxu1 %v1816_v40  ;;  %v1650_v46 = vpack.c.bf16 %v1375_v44, %v1373_v43 }
 0x126   : > { %1613 = vmatprep.subr.bf16.mxu1 %v1612_v50  ;;  %v1377_v50 = vld [vmem:[%s2507_s3 + $0x280] sm:$0xff] }
 0x127   : > { %v1654_v54 = vpack.c.bf16 %v1379_v51, %v1377_v50 }
 0x129   : > { %1615 = vmatpush1.bf16.msra.mxu1 %v1614_v55  ;;  %v1656_v55 = vpack.c.bf16 %v1384_v53, %v1382_v52 }
 0x12a   : > { %1617 = vmatprep.subr.bf16.mxu1 %v1616_v56  ;;  %v1381_v56 = vld [vmem:[%s2507_s3 + $0x2a0] sm:$0xff] }
 0x12b   : > { %v1658_v60 = vpack.c.bf16 %v1383_v57, %v1381_v56 }
 0x12d   : > { %1619 = vmatpush1.bf16.msra.mxu1 %v1618_v61  ;;  %v1660_v61 = vpack.c.bf16 %v1388_v59, %v1386_v58 }
 0x12e   : > { %1621 = vmatprep.subr.bf16.mxu1 %v1620_v62  ;;  %v1385_v62 = vld [vmem:[%s2507_s3 + $0x2c0] sm:$0xff] }
 0x12f   : > { %v1662_v2 = vpack.c.bf16 %v1387_v63, %v1385_v62 }
 0x131   : > { %1623 = vmatpush1.bf16.msra.mxu1 %v1622_v3  ;;  %v1664_v3 = vpack.c.bf16 %v1392_v1, %v1390_v0 }
 0x132   : > { %1625 = vmatprep.subr.bf16.mxu1 %v1624_v4  ;;  %v1389_v4 = vld [vmem:[%s2507_s3 + $0x2e0] sm:$0xff] }
 0x133   : > { %v1666_v6 = vpack.c.bf16 %v1391_v5, %v1389_v4 }
 0x135   : > { %1627 = vmatpush1.bf16.msra.mxu1 %v1626_v9  ;;  %v1694_v9 = vpack.c.bf16 %v1056_v8, %v1055_v7 }
 0x136   : > { %1629 = vmatprep.subr.bf16.mxu1 %v1628_v10  ;;  %v1073_v10 = vld [vmem:[%s2509_s5 + $0xf0] sm:$0xff] }
 0x137   : > { %1695 = vmatpush3.bf16.msra.mxu0 %v1694_v9 }
 0x139   : > { %1631 = vmatpush1.bf16.msra.mxu1 %v1630_v15  ;;  %v1023_v15 = vsub.s32 0, %v1022_v14 }
 0x13a   : > { %1633 = vmatprep.subr.bf16.mxu1 %v1632_v16  ;;  %v1019_v16 = vld [vmem:[%s2508_s4] sm:$0x3] }
 0x13b   : > { %v1024_v19 = vrot.slane %v1019_v16, %v1023_v15  ;;  %v1028_v21 = vrot.slane %v1019_v16, %v1027_v17 }
 0x13d   : > { %1635 = vmatpush1.bf16.msra.mxu1 %v1634_v18 }
 0x13e   : > { %1637 = vmatprep.subr.bf16.mxu1 %v1636_v23 }
 0x140   : > { %1360 = vmatmul.mubr.msk.f32.vlgmr.msra.gmra.mrb[0].mxu1 %vm1359_vm4, %v2220_v26  ;;  %v1376_v26 = vld [vmem:[%s2507_s3 + $0x278] sm:$0xff] }
 0x141   : > { %1639 = vmatpush1.bf16.msra.mxu1 %v1638_v28  ;;  %891 = vmatprep.mubr.f32.mxu1 %v1816_v40  ;;  %v1648_v42 = vpack.c.bf16 %v1376_v26, %v1374_v39 }
 0x142   : > { %1641 = vmatprep.subr.bf16.mxu1 %v1640_v29 }
 0x144   : > { %892 = vmatmul.mubr.f32.gmra.mrb[2].mxu1 %v2231_v33  ;;  %v1380_v33 = vld [vmem:[%s2507_s3 + $0x298] sm:$0xff] }
 0x145   : > { %1643 = vmatpush1.bf16.msra.mxu1 %v1642_v35  ;;  %1002 = vmatprep.mubr.f32.mxu1 %v1816_v40  ;;  %v1652_v49 = vpack.c.bf16 %v1380_v33, %v1378_v45  ;;  %v1157_v33 = vld [vmem:[%s2510_s6] sm:$0x1] }
 0x146   : > { %1645 = vmatprep.subr.bf16.mxu1 %v1644_v36 }
 0x149   : > { %1647 = vmatpush1.bf16.msra.mxu1 %v1646_v41 }
 0x14a   : > { %1649 = vmatprep.subr.bf16.mxu1 %v1648_v42 }
 0x14d   : > { %1651 = vmatpush1.bf16.msra.mxu1 %v1650_v46 }
 0x14e   : > { %1653 = vmatprep.subr.bf16.mxu1 %v1652_v49 }
 0x151   : > { %1655 = vmatpush1.bf16.msra.mxu1 %v1654_v54 }
 0x152   : > { %1657 = vmatprep.subr.bf16.mxu1 %v1656_v55 }
 0x155   : > { %1659 = vmatpush1.bf16.msra.mxu1 %v1658_v60 }
 0x156   : > { %1661 = vmatprep.subr.bf16.mxu1 %v1660_v61 }
 0x159   : > { %1663 = vmatpush1.bf16.msra.mxu1 %v1662_v2 }
 0x15a   : > { %1665 = vmatprep.subr.bf16.mxu1 %v1664_v3 }
 0x15d   : > { %1667 = vmatpush1.bf16.msra.mxu1 %v1666_v6 }
 0x160   : > { %1003 = vmatmul.mubr.f32.vlgmr.msra.gmra.mrb[0].mxu1 %v2252_v47 }
 0x161   : > { %1008 = vmatprep.mubr.f32.mxu1 %v1816_v40  ;;  %v1074_v40 = vld [vmem:[%s2509_s5 + $0xf8] sm:$0xff] }
 0x162   : > { %v1696_v47 = vpack.c.bf16 %v1074_v40, %v1073_v10 }
 0x164   : > { %1009 = vmatmul.mubr.f32.gmra.mrb[2].mxu1 %v2255_v48  ;;  %v1057_v48 = vld [vmem:[%s2509_s5 + $0x70] sm:$0xff]  ;;  %1697 = vmatprep.subr.bf16.mxu0 %v1696_v47 }
 0x165   : > { %v1698_v12 = vpack.c.bf16 %v1058_v11, %v1057_v48 }
 0x167   : > { %1699 = vmatpush3.bf16.msra.mxu0 %v1698_v12 }
 0x233   : > { %v1004_v22 = vpop.f32.mrb[0].mxu1 }
 0x234   : > { %v1031_v18 = vadd.f32 %v1024_v19, %v1004_v22  ;;  %v1006_v23 = vpop.f32.mrb[1].mxu1 }
 0x235   : > { %v1032_v24 = vadd.f32 %v1028_v21, %v1006_v23 }
 0x236   : > { %v1035_v25 = vmax.f32 %v1031_v18, 0.0 }
 0x237   : > { %v1036_v20 = vmax.f32 %v1032_v24, 0.0  ;;  %v1010_v27 = vpop.f32.mrb[2].mxu1 }
 0x238   : > { %1039 = vst [vmem:[%s354_s16] sm:$0xff] %v1035_v25  ;;  %v1033_v28 = vadd.f32 %v1024_v19, %v1010_v27  ;;  %v1012_v29 = vpop.f32.mrb[3].mxu1 }
 0x239   : > { %1040 = vst [vmem:[%s354_s16 + $0x8] sm:$0xff] %v1036_v20  ;;  %v1034_v30 = vadd.f32 %v1028_v21, %v1012_v29  ;;  %1139 = vmatprep.mubr.f32.mxu0 %v1036_v20 }
 0x23a   : > { %v1037_v31 = vmax.f32 %v1033_v28, 0.0  ;;  %1140 = vmatmul.mubr.f32.vlgmr.msra.gmra.mrb[2].mxu0 %v1035_v25 }
 0x23b   : > { %v1038_v32 = vmax.f32 %v1034_v30, 0.0 }
 0x23c   : > { %1041 = vst [vmem:[%s354_s16 + $0x10] sm:$0xff] %v1037_v31 }
 0x23d   : > { %1042 = vst [vmem:[%s354_s16 + $0x18] sm:$0xff] %v1038_v32  ;;  %1144 = vmatprep.mubr.f32.mxu0 %v1038_v32  ;;  %s1756_s16 = sshll.u32 %s1817_s13, 4  ;;  %s1757_s16 = int_to_ptr.vmem [resolvable:$false] %s1756_s16 }
 0x23e   : > { %1145 = vmatmul.mubr.f32.gmra.mrb[4].mxu0 %v1037_v31  ;;  %s1758_s17 = scalar_lea.vmem %s1757_s16, 32  ;;  %p1759_p0 = scmp.lt.s32.totalorder %s2464_s26, %s1757_s16 }
 0x23f   : > { %p1760_p1 = scmp.lt.s32.totalorder %s1758_s17, %s1752_s14 }
 0x241   : > { %p1761_p2 = por %p1760_p1, %p1759_p0 }
 0x243   : > { %p1762_p3 = pnand %p1761_p2, %p1755_p13 }
 0x30d   : > { %v1461_v34 = vpop.f32.mrb[2].mxu0 }
 0x30e   : > { %v1462_v35 = vpop.f32.mrb[3].mxu0 }
 0x30f   : > { %v1463_v36 = vadd.f32 %v1462_v35, %v1461_v34 }
 0x311   : > { %v1464_v37 = vpop.f32.mrb[4].mxu0 }
 0x312   : > { %v1465_v38 = vpop.f32.mrb[5].mxu0 }
 0x313   : > { %v1466_v39 = vadd.f32 %v1465_v38, %v1464_v37 }
 0x315   : > { %v1150_v26 = vadd.f32 %v1466_v39, %v1463_v36 }
 0x317   : > { %v1151_v41 = vrot.slane %v1150_v26, 4 }
 0x319   : > { %v1152_v42 = vadd.f32 %v1151_v41, %v1150_v26 }
 0x31b   : > { %v1153_v43 = vrot.slane %v1152_v42, 2 }
 0x31d   : > { %v1154_v44 = vadd.f32 %v1153_v43, %v1152_v42 }
 0x31f   : > { %v1155_v45 = vrot.slane %v1154_v44, 1 }
 0x321   : > { %v1156_v46 = vadd.f32 %v1155_v45, %v1154_v44 }
 0x323   : > { %v1158_v49 = vadd.f32 %v1157_v33, %v1156_v46 }
 0x325   : > { %1159 = vst [vmem:[%s339_s25] sm:$0x1] %v1158_v49 }
 0x326   : > { %1765 = shalt.err (!%p1762_p3)
}
 0x327   : > { %s1766_s21 = scalar_lea.hbm %s2462_s22, 16  ;;  %s1770_s25 = scalar_lea.hbm %s2513_s9, 32 }
 0x328   : > { %p1767_p4 = scmp.ne.s32.totalorder %s2462_s22, %s1766_s21  ;;  %p1771_p9 = scmp.lt.u32.totalorder %s2462_s22, %s2513_s9 }
 0x329   : > { %p1772_p10 = scmp.lt.u32.totalorder %s1770_s25, %s1766_s21  ;;  %p1774_p12 = scmp.lt.u32.totalorder %s1766_s21, %s2462_s22 }
 0x32a   : > { %p1768_p7 = pnand %p1767_p4, %p1906_p5 }
 0x32b   : > { %p1773_p11 = por %p1772_p10, %p1771_p9 }
 0x32c   : > { %p1769_p8 = pneg %p1768_p7 }
 0x32d   : > { %p1775_p13 = por %p1774_p12, %p1773_p11 }
 0x32f   : > { %p1776_p0 = pnand %p1775_p13, %p1769_p8 }
 0x331   : > { %1779 = shalt.err (!%p1776_p0)
}
 0x332   : > { %1712 = dma.vmem_to_hbm [thread:$0]  (%p1906_p5), %s2464_s26, 16, %s2462_s22, %s1171_s29  }
 0x333 PF: > { %p1718_p1 = scmp.ge.s32.totalorder %s1814_s12, 2  ;;  %s1217_s14 = sand.u32 1, %s1802_s30  }
 0x334   : > { %s1218_s13 = scalar_lea.sflag [#allocation3], %s1217_s14 }
 0x335   : > { %p1715_p2 = pnand %p1718_p1, %p1910_p6 }
 0x337   : > { %1797 = dma.done.wait (!%p1715_p2), %s1218_s13, 16  }
 0x338   : > { %1799 = vsyncadd (!%p1715_p2), %s1218_s13, 4294967280  ;;  %p20_p3 = scmp.ge.s32.totalorder %s1893_s15, 4   ;;  %s2518_s30 = smov %s1806_s10 }
 0x339   : > { %s2519_s10 = smov %s1810_s11  ;;  %s2520_s11 = smov %s1904_s18 }
 0x33a   : > { %s2521_s12 = smov %s1893_s15  ;;  %22 = sbr.rel (!%p20_p3) target bundleno = 3 (0x3), region = 111 }
 0x341   :  { %1222 = vsyncpa [#allocation3], 1 }
 0x342   :  { %1224 = vsyncpa [#allocation3 + $0x1], 1 }

</bundles_post_ra>
